<compile_context>
chip_gen: v5e
topology: v5e:2x2
jax: 0.10.0
libtpu: 0.0.40
codegen_flags: <defaults>
</compile_context>

<pallas_src>
import math

import jax
import jax.numpy as jnp
from jax.experimental import pallas as pl
from jax.experimental.pallas import tpu as pltpu


def ffn_kernel(x_ref, w1_ref, b1_ref, w2_ref, b2_ref, o_ref, acc_ref):
    """One (row-tile i, hidden-tile k) step of relu(x@W1+b1)@W2 + b2."""
    k = pl.program_id(1)

    @pl.when(k == 0)
    def _init():
        acc_ref[...] = jnp.zeros_like(acc_ref)

    # dense1 chunk: MXU matmul with f32 accumulation; bias + ReLU on the VPU.
    h = jnp.dot(x_ref[...], w1_ref[...], preferred_element_type=jnp.float32)
    h = jnp.maximum(h + b1_ref[...], 0.0)
    # dense2 chunk: accumulate this hidden slice's contribution in f32.
    acc_ref[...] += jnp.dot(h.astype(w2_ref.dtype), w2_ref[...],
                            preferred_element_type=jnp.float32)

    @pl.when(k == pl.num_programs(1) - 1)
    def _finalize():
        o_ref[...] = (acc_ref[...] + b2_ref[...]).astype(o_ref.dtype)


def _round_up(n, m):
    return (n + m - 1) // m * m


def _vmem_need_bytes(TM, TK, d_in_p, d_out_p, xw_isize, out_isize):
    """Over-estimate of VMEM footprint for tile selection / vmem_limit_bytes."""
    need = 0
    need += 2 * TM * d_in_p * xw_isize        # x row tiles (double-buffered)
    need += 2 * d_in_p * TK * xw_isize        # W1 column tiles
    need += 2 * 8 * TK * 4                    # b1 tiles (sublane padded, f32)
    need += 2 * TK * d_out_p * xw_isize       # W2 row tiles
    need += 2 * 8 * d_out_p * 4               # b2
    need += 2 * TM * d_out_p * out_isize      # output tiles
    need += TM * d_out_p * 4                  # f32 accumulator scratch
    need += TM * TK * 4                       # f32 hidden intermediate
    return need


def position_wise_ffn(x, w1, b1, w2, b2, *, tm=512, tk=512,
                      mxu_dtype=jnp.bfloat16):
    """x: (B, S, d_in); w1: (d_in, d_hid); b1: (d_hid,);
       w2: (d_hid, d_out); b2: (d_out,)."""
    B, S, d_in = x.shape
    d_hid = w1.shape[1]
    d_out = w2.shape[1]
    M = B * S

    # Feed the MXU bf16 when the caller passes f32 (f32 accumulation retained).
    if mxu_dtype is not None and x.dtype == jnp.float32:
        xw_dtype = jnp.dtype(mxu_dtype)
    else:
        xw_dtype = jnp.dtype(x.dtype)
    out_dtype = x.dtype

    d_in_p = _round_up(d_in, 128)
    d_hid_p = _round_up(d_hid, 128)
    d_out_p = _round_up(d_out, 128)
    M8 = _round_up(M, 8)

    # --- tile selection under an explicit per-generation VMEM budget --------
    try:
        vmem_cap = int(pltpu.get_tpu_info().vmem_capacity_bytes)
    except Exception:
        vmem_cap = 64 << 20                      # conservative (v7x per-TC)
    budget = min(vmem_cap * 3 // 4, 100 << 20)

    TM = min(tm, M8)
    # Keep >= 2 row tiles when M allows so dual-TC chips (v7x) shard the
    # "parallel" axis across both TensorCores.
    if M8 >= 16 and M8 // TM < 2:
        TM = _round_up((M8 + 1) // 2, 8)
    TK = min(tk, d_hid_p)

    xw_isize = xw_dtype.itemsize
    out_isize = jnp.dtype(out_dtype).itemsize
    while (_vmem_need_bytes(TM, TK, d_in_p, d_out_p, xw_isize, out_isize)
           > budget and TK > 128):
        TK = max(128, _round_up(TK // 2, 128))
    while (_vmem_need_bytes(TM, TK, d_in_p, d_out_p, xw_isize, out_isize)
           > budget and TM > 8):
        TM = max(8, _round_up(TM // 2, 8))
    # TODO(synk): for extreme d_in/d_out, also split those dims over extra grid axes.

    M_p = _round_up(M8, TM)
    d_hid_p = _round_up(d_hid_p, TK)             # make TK divide padded hidden dim
    need = _vmem_need_bytes(TM, TK, d_in_p, d_out_p, xw_isize, out_isize)
    vmem_limit = max(min(2 * need + (4 << 20), budget), 32 << 20)

    # --- lane-dense zero padding (skipped when already aligned) -------------
    def _pad2d(a, rows, cols, dtype):
        a = a.astype(dtype)
        r, c = a.shape
        if (r, c) == (rows, cols):
            return a
        return jnp.zeros((rows, cols), dtype).at[:r, :c].set(a)

    # TODO(synk): hoist weight/bias padding + bf16 cast to parameter-init time
    # when the same parameters are reused across many calls.
    x2d = _pad2d(x.reshape(M, d_in), M_p, d_in_p, xw_dtype)
    w1_p = _pad2d(w1, d_in_p, d_hid_p, xw_dtype)
    b1_p = _pad2d(b1.reshape(1, d_hid), 1, d_hid_p, jnp.float32)
    w2_p = _pad2d(w2, d_hid_p, d_out_p, xw_dtype)
    b2_p = _pad2d(b2.reshape(1, d_out), 1, d_out_p, jnp.float32)

    cost = pl.CostEstimate(
        flops=2 * M_p * (d_in_p * d_hid_p + d_hid_p * d_out_p),
        bytes_accessed=(x2d.size * xw_isize + w1_p.size * xw_isize
                        + w2_p.size * xw_isize + b1_p.size * 4 + b2_p.size * 4
                        + M_p * d_out_p * out_isize),
        transcendentals=0,
    )

    out2d = pl.pallas_call(
        ffn_kernel,
        out_shape=jax.ShapeDtypeStruct((M_p, d_out_p), out_dtype),
        grid_spec=pltpu.PrefetchScalarGridSpec(
            num_scalar_prefetch=0,
            grid=(M_p // TM, d_hid_p // TK),
            in_specs=[
                # x: one row tile per i, reused across k (no re-DMA on revisit).
                pl.BlockSpec((TM, d_in_p), lambda i, k: (i, 0)),
                # W1 / b1 / W2: streamed hidden-dim chunks (double-buffered).
                pl.BlockSpec((d_in_p, TK), lambda i, k: (0, k)),
                pl.BlockSpec((1, TK), lambda i, k: (0, k)),
                pl.BlockSpec((TK, d_out_p), lambda i, k: (k, 0)),
                # b2: tiny, constant.
                pl.BlockSpec((1, d_out_p), lambda i, k: (0, 0)),
            ],
            out_specs=pl.BlockSpec((TM, d_out_p), lambda i, k: (i, 0)),
            scratch_shapes=[pltpu.VMEM((TM, d_out_p), jnp.float32)],
        ),
        compiler_params=pltpu.CompilerParams(
            dimension_semantics=("parallel", "arbitrary"),
            vmem_limit_bytes=int(vmem_limit),
        ),
        cost_estimate=cost,
    )(x2d, w1_p, b1_p, w2_p, b2_p)

    return out2d[:M, :d_out].reshape(B, S, d_out)


def init_linear_params(key, in_features, out_features, dtype=jnp.float32):
    """Deterministic init mimicking nn.Linear default (uniform +/-1/sqrt(fan_in)).
    Weight stored as (in, out) == PyTorch weight.T so the kernel does x @ W."""
    kw, kb = jax.random.split(key)
    bound = 1.0 / math.sqrt(in_features)
    w = jax.random.uniform(kw, (in_features, out_features), dtype,
                           minval=-bound, maxval=bound)
    b = jax.random.uniform(kb, (out_features,), dtype,
                           minval=-bound, maxval=bound)
    return w, b


if __name__ == "__main__":
    # Small shapes consistent with the module: batch=2, seq=8,
    # ffn_num_input=16, ffn_num_hiddens=32, ffn_num_output=16.
    B, S = 2, 8
    d_in, d_hid, d_out = 16, 32, 16

    key = jax.random.PRNGKey(0)
    kx, k1, k2 = jax.random.split(key, 3)

    x = jax.random.normal(kx, (B, S, d_in), dtype=jnp.float32)
    w1, b1 = init_linear_params(k1, d_in, d_hid)
    w2, b2 = init_linear_params(k2, d_hid, d_out)

    out_bf16 = position_wise_ffn(x, w1, b1, w2, b2)                 # default bf16 MXU path
    out_f32 = position_wise_ffn(x, w1, b1, w2, b2, mxu_dtype=None)  # exact f32 path
    jax.block_until_ready((out_bf16, out_f32))

    # Pure-JAX reference check.
    ref = jnp.maximum(x @ w1 + b1, 0.0) @ w2 + b2
    assert out_f32.shape == (B, S, d_out)
    assert out_bf16.shape == (B, S, d_out)
    assert jnp.allclose(out_f32, ref, atol=1e-5, rtol=1e-5)
    # bf16 MXU inputs with f32 accumulation: looser tolerance, as expected.
    assert jnp.allclose(out_bf16, ref, atol=2e-2, rtol=2e-2)

    print("KERNEL_OK")
</pallas_src>

<mosaic_0001>
module attributes {stable_mosaic.version = 11 : i64} {
  func.func @ffn_kernel(%arg0: i32, %arg1: i32, %arg2: memref<8x128xbf16, #tpu.memory_space<vmem>>, %arg3: memref<128x128xbf16, #tpu.memory_space<vmem>>, %arg4: memref<1x128xf32, #tpu.memory_space<vmem>>, %arg5: memref<128x128xbf16, #tpu.memory_space<vmem>>, %arg6: memref<1x128xf32, #tpu.memory_space<vmem>>, %arg7: memref<8x128xf32, #tpu.memory_space<vmem>>, %arg8: memref<8x128xf32, #tpu.memory_space<vmem>>) attributes {dimension_semantics = [#tpu.dimension_semantics<parallel>, #tpu.dimension_semantics<arbitrary>], iteration_bounds = array<i64: 2, 1>, scalar_prefetch = 0 : i64, scratch_operands = 1 : i64, tpu.core_type = #tpu.core_type<tc>, window_params = [{transform_indices = @transform_0, window_bounds = array<i64: 8, 128>}, {transform_indices = @transform_1, window_bounds = array<i64: 128, 128>}, {transform_indices = @transform_2, window_bounds = array<i64: 1, 128>}, {transform_indices = @transform_3, window_bounds = array<i64: 128, 128>}, {pipeline_mode = #tpu.pipeline_mode<synchronous>, transform_indices = @transform_4, window_bounds = array<i64: 1, 128>}, {transform_indices = @transform_5, window_bounds = array<i64: 8, 128>}]} {
    %c0_i32 = arith.constant 0 : i32
    %0 = arith.cmpi eq, %arg1, %c0_i32 : i32
    %1 = arith.extui %0 : i1 to i32
    %c0_i32_0 = arith.constant 0 : i32
    %2 = arith.cmpi ne, %1, %c0_i32_0 : i32
    scf.if %2 {
      %cst_16 = arith.constant 0.000000e+00 : f32
      %20 = vector.broadcast %cst_16 : f32 to vector<8x128xf32>
      %c0_17 = arith.constant 0 : index
      %c0_18 = arith.constant 0 : index
      %21 = vector.load %arg8[%c0_17, %c0_18] : memref<8x128xf32, #tpu.memory_space<vmem>>, vector<8x128xf32>
      tpu.vector_store %arg8[%c0_17, %c0_18], %20 {strides = array<i32>} : memref<8x128xf32, #tpu.memory_space<vmem>>, vector<8x128xf32>,
    } else {
    }
    %c0 = arith.constant 0 : index
    %c0_1 = arith.constant 0 : index
    %3 = vector.load %arg2[%c0, %c0_1] : memref<8x128xbf16, #tpu.memory_space<vmem>>, vector<8x128xbf16>
    %c0_2 = arith.constant 0 : index
    %c0_3 = arith.constant 0 : index
    %4 = vector.load %arg3[%c0_2, %c0_3] : memref<128x128xbf16, #tpu.memory_space<vmem>>, vector<128x128xbf16>
    %cst = arith.constant dense<0.000000e+00> : vector<8x128xf32>
    %5 = tpu.matmul %3, %4, %cst {dimension_numbers = #tpu.dot_dimension_numbers<[1], [0], [0], [1], [0, 0, 1, 1], [], []>} : vector<8x128xbf16>, vector<128x128xbf16>, vector<8x128xf32> -> vector<8x128xf32>
    %c0_4 = arith.constant 0 : index
    %c0_5 = arith.constant 0 : index
    %6 = vector.load %arg4[%c0_4, %c0_5] : memref<1x128xf32, #tpu.memory_space<vmem>>, vector<1x128xf32>
    %7 = vector.broadcast %6 : vector<1x128xf32> to vector<8x128xf32>
    %8 = arith.addf %5, %7 : vector<8x128xf32>
    %cst_6 = arith.constant 0.000000e+00 : f32
    %9 = vector.broadcast %cst_6 : f32 to vector<8x128xf32>
    %10 = arith.maximumf %8, %9 : vector<8x128xf32>
    %c0_7 = arith.constant 0 : index
    %c0_8 = arith.constant 0 : index
    %11 = vector.load %arg8[%c0_7, %c0_8] : memref<8x128xf32, #tpu.memory_space<vmem>>, vector<8x128xf32>
    %12 = arith.truncf %10 : vector<8x128xf32> to vector<8x128xbf16>
    %c0_9 = arith.constant 0 : index
    %c0_10 = arith.constant 0 : index
    %13 = vector.load %arg5[%c0_9, %c0_10] : memref<128x128xbf16, #tpu.memory_space<vmem>>, vector<128x128xbf16>
    %cst_11 = arith.constant dense<0.000000e+00> : vector<8x128xf32>
    %14 = tpu.matmul %12, %13, %cst_11 {dimension_numbers = #tpu.dot_dimension_numbers<[1], [0], [0], [1], [0, 0, 1, 1], [], []>} : vector<8x128xbf16>, vector<128x128xbf16>, vector<8x128xf32> -> vector<8x128xf32>
    %15 = arith.addf %11, %14 : vector<8x128xf32>
    %c0_12 = arith.constant 0 : index
    %c0_13 = arith.constant 0 : index
    %16 = vector.load %arg8[%c0_12, %c0_13] : memref<8x128xf32, #tpu.memory_space<vmem>>, vector<8x128xf32>
    tpu.vector_store %arg8[%c0_12, %c0_13], %15 {strides = array<i32>} : memref<8x128xf32, #tpu.memory_space<vmem>>, vector<8x128xf32>,
    %c0_i32_14 = arith.constant 0 : i32
    %17 = arith.cmpi eq, %arg1, %c0_i32_14 : i32
    %18 = arith.extui %17 : i1 to i32
    %c0_i32_15 = arith.constant 0 : i32
    %19 = arith.cmpi ne, %18, %c0_i32_15 : i32
    scf.if %19 {
      %c0_16 = arith.constant 0 : index
      %c0_17 = arith.constant 0 : index
      %20 = vector.load %arg8[%c0_16, %c0_17] : memref<8x128xf32, #tpu.memory_space<vmem>>, vector<8x128xf32>
      %c0_18 = arith.constant 0 : index
      %c0_19 = arith.constant 0 : index
      %21 = vector.load %arg6[%c0_18, %c0_19] : memref<1x128xf32, #tpu.memory_space<vmem>>, vector<1x128xf32>
      %22 = vector.broadcast %21 : vector<1x128xf32> to vector<8x128xf32>
      %23 = arith.addf %20, %22 : vector<8x128xf32>
      %c0_20 = arith.constant 0 : index
      %c0_21 = arith.constant 0 : index
      %24 = vector.load %arg7[%c0_20, %c0_21] : memref<8x128xf32, #tpu.memory_space<vmem>>, vector<8x128xf32>
      tpu.vector_store %arg7[%c0_20, %c0_21], %23 {strides = array<i32>} : memref<8x128xf32, #tpu.memory_space<vmem>>, vector<8x128xf32>,
    } else {
    }
    return
  }
  func.func @transform_0(%arg0: i32, %arg1: i32) -> (i32, i32) {
    %c0_i32 = arith.constant 0 : i32
    %c0_i32_0 = arith.constant 0 : i32
    return %arg0, %c0_i32 : i32, i32
  }
  func.func @transform_1(%arg0: i32, %arg1: i32) -> (i32, i32) {
    %c0_i32 = arith.constant 0 : i32
    %c0_i32_0 = arith.constant 0 : i32
    return %c0_i32, %arg1 : i32, i32
  }
  func.func @transform_2(%arg0: i32, %arg1: i32) -> (i32, i32) {
    %c0_i32 = arith.constant 0 : i32
    %c0_i32_0 = arith.constant 0 : i32
    return %c0_i32, %arg1 : i32, i32
  }
  func.func @transform_3(%arg0: i32, %arg1: i32) -> (i32, i32) {
    %c0_i32 = arith.constant 0 : i32
    %c0_i32_0 = arith.constant 0 : i32
    return %arg1, %c0_i32 : i32, i32
  }
  func.func @transform_4(%arg0: i32, %arg1: i32) -> (i32, i32) {
    %c0_i32 = arith.constant 0 : i32
    %c0_i32_0 = arith.constant 0 : i32
    %c0_i32_1 = arith.constant 0 : i32
    return %c0_i32, %c0_i32_0 : i32, i32
  }
  func.func @transform_5(%arg0: i32, %arg1: i32) -> (i32, i32) {
    %c0_i32 = arith.constant 0 : i32
    %c0_i32_0 = arith.constant 0 : i32
    return %arg0, %c0_i32 : i32, i32
  }
}

</mosaic_0001>

<bundles_post_ra>
// kernel: tpu_custom_call.1
= control target key start
LH: loop header
LB: loop body
LE: loop exit
PB: predicated region body
PF: predicated region fallthrough
CT: control target
= control target key end

     0   :  { %10 = vsyncpa [#allocation4], 0  ;;  %s1176_s0 = inlined_call_operand.hbm [shape: bf16[16,128], index: 0, kind: input, shape index: {}]   ;;  %s1177_s1 = inlined_call_operand.hbm [shape: bf16[128,128], index: 1, kind: input, shape index: {}]   ;;  %s1178_s2 = inlined_call_operand.vmem [shape: f32[1,128], index: 2, kind: input, shape index: {}]   ;;  %s1179_s3 = inlined_call_operand.hbm [shape: bf16[128,128], index: 3, kind: input, shape index: {}]   ;;  %s1180_s4 = inlined_call_operand.vmem [shape: f32[1,128], index: 4, kind: input, shape index: {}]   ;;  %s1181_s5 = inlined_call_operand.hbm [shape: f32[16,128], index: 5, kind: output, shape index: {}]  }
   0x1   :  { %12 = vsyncpa [#allocation4 + $0x1], 0 }
   0x2   :  { %13 = vsyncpa [#allocation7], 0 }
   0x3   :  { %14 = vsyncpa [#allocation5], 0 }
   0x4   :  { %16 = vsyncpa [#allocation5 + $0x1], 0  ;;  %s1022_s18 = smov 0   ;;  %s1024_s19 = smov 0  }
   0x5   :  { %s1026_s20 = smov 0   ;;  %s1028_s21 = smov 0  }
   0x6   :  { %s1030_s22 = smov 0   ;;  %s1032_s23 = smov 0  }
   0x7 LB: > { %s625_s24 = sadd.s32 4294967295, %s986_s23   ;;  %p627_p0 = scmp.ge.s32.totalorder %s986_s23, 1  ;;  %s986_s23 = sphi %s1032_s23, %s22_s23   ;;  %s982_s22 = sphi %s1030_s22, %s1191_s22   ;;  %s978_s21 = sphi %s1028_s21, %s1190_s21   ;;  %s974_s20 = sphi %s1026_s20, %s1189_s20   ;;  %s970_s19 = sphi %s1024_s19, %s1188_s19   ;;  %s966_s18 = sphi %s1022_s18, %s1187_s18  }
   0x8   : > { %p1056_p1 = scmp.eq.s32.totalorder %s625_s24, 0  ;;  %p190_p2 = scmp.lt.s32.totalorder %s986_s23, 3 }
   0x9   : > { %s203_s28 = sshll.u32 %s1177_s1, 4  ;;  %s988_s30 = smov [#allocation6]   ;;  %s204_s28 = int_to_ptr.hbm [resolvable:$true] %s203_s28 }
   0xa   : > { %p1064_p3 = pnand %p627_p0, %p190_p2  ;;  %s205_s6 = sshll.u32 %s988_s30, 4  ;;  %s206_s6 = int_to_ptr.vmem [resolvable:$true] %s205_s6 }
   0xb   : > { %p631_p6 = scmp.ge.s32.totalorder %s986_s23, 2  ;;  %s226_s9 = sshll.u32 %s1179_s3, 4  ;;  %s227_s9 = int_to_ptr.hbm [resolvable:$true] %s226_s9 }
   0xc   : > { %p735_p4 = pneg %p1064_p3  ;;  %s989_s10 = smov 64  }
   0xd   : > { %s990_s11 = smov 4   ;;  %s991_s12 = smov [#allocation8]  }
   0xe   : > { %p736_p5 = pnand %p735_p4, %p1056_p1  ;;  %s228_s13 = sshll.u32 %s991_s12, 4  ;;  %s229_s13 = int_to_ptr.vmem [resolvable:$true] %s228_s13 }
   0xf   : > { %s34_s14 = sadd.s32 1, %s982_s22  ;;  %s626_s15 = sadd.s32 4294967294, %s986_s23  }
  0x10   : > { %738 = dma.hbm_to_vmem [thread:$0]  (!%p736_p5), %s204_s28, 1024, %s206_s6, [#allocation7], %s989_s10, %s989_s10, %s990_s11  }
  0x11   : > { %741 = dma.hbm_to_vmem [thread:$0]  (!%p736_p5), %s227_s9, 1024, %s229_s13, [#allocation7], %s989_s10, %s989_s10, %s990_s11  }
  0x12   : > { %p36_p7 = scmp.ge.s32.totalorder %s34_s14, 2  ;;  %s41_s16 = sadd.s32 1, %s974_s20 }
  0x13   : > { %p48_p8 = scmp.ne.s32.totalorder %s974_s20, %s970_s19  ;;  %p49_p9 = scmp.eq.s32.totalorder %s986_s23, 0 }
  0x14   : > { %s1193_s14 = smov (%p36_p7, %s34_s14), 0  ;;  %p54_p10 = scmp.ne.s32.totalorder %s970_s19, %s966_s18 }
  0x15   : > { %s38_s17 = ssub.s32 %s982_s22, %s1193_s14  ;;  %p177_p11 = scmp.eq.s32.totalorder %s625_s24, 1 }
  0x16   : > { %p39_p12 = scmp.eq.s32.totalorder %s38_s17, 0  ;;  %p1092_p13 = por %p1056_p1, %p54_p10 }
  0x17   : > { %p1096_p0 = por %p177_p11, %p48_p8  ;;  %p183_p2 = scmp.eq.s32.totalorder %s626_s15, 1 }
  0x18   : > { %s1101_s28 = scalar_select %p39_p12, %s974_s20, %s41_s16  }
  0x19   : > { %p50_p4 = por %p49_p9, %p48_p8  ;;  %p1103_p5 = por %p183_p2, %p54_p10 }
  0x1a   : > { %s245_s6 = sand.u32 1, %s974_s20   ;;  %s633_s24 = sshll.u32 %s982_s22, 2 }
  0x1b   : > { %p752_p7 = scmp.lt.s32.totalorder %s986_s23, 2  ;;  %s632_s7 = sshll.u32 %s245_s6, 2 }
  0x1c   : > { %s253_s10 = scalar_lea.hbm %s1176_s0, %s633_s24  ;;  %s249_s12 = scalar_lea.vmem [#allocation3], %s632_s7 }
  0x1d   : > { %s255_s11 = sshll.u32 %s253_s10, 4  ;;  %s257_s13 = sshll.u32 %s249_s12, 4  ;;  %s256_s11 = int_to_ptr.hbm [resolvable:$true] %s255_s11  ;;  %s258_s13 = int_to_ptr.vmem [resolvable:$true] %s257_s13 }
  0x1e   : > { %p743_p11 = pnand %p752_p7, %p50_p4  ;;  %s246_s15 = scalar_lea.sflag [#allocation4], %s245_s6 }
  0x1f   : > { %266 = sbr.rel (%p1064_p3) target bundleno = 337 (0x151), region = 40  ;;  %s1116_s16 = sand.u32 (!%p1064_p3), 1, %s970_s19  }
  0x20   : > { %745 = dma.hbm_to_vmem [thread:$0]  (!%p743_p11), %s256_s11, 64, %s258_s13, %s246_s15  }
  0x21   : > { %s635_s17 = sshll.u32 (!%p1064_p3), %s1116_s16, 2  ;;  %s269_s8 = scalar_lea.sflag (!%p1064_p3), [#allocation4], %s1116_s16 }
  0x22   : > { %s1120_s24 = scalar_lea.vmem (!%p1064_p3), [#allocation3], %s635_s17 }
  0x24   : > { %953 = dma.done.wait (%p1092_p13), %s269_s8, 64  }
  0x25   : > { %955 = vsyncadd (%p1092_p13), %s269_s8, 4294967232 }
  0x26   : > { %957 = dma.done.wait (%p1056_p1), [#allocation7], 2048  }
  0x27   : > { %959 = vsyncadd (%p1056_p1), [#allocation7], 4294965248  ;;  %v714_v0 = vld [vmem:[#allocation6 + $0x38] sm:$0xff]  ;;  %v713_v1 = vld [vmem:[#allocation6 + $0x30] sm:$0xff]  ;;  %s704_s26 = sshll.u32 %s978_s21, 3  ;;  %s638_s6 = sshll.u32 %s1116_s16, 3 }
  0x28   : > { %391 = vmatpush.bf16.msra.mxu0 %v714_v0  ;;  %v722_v2 = vld [vmem:[#allocation8 + $0x38] sm:$0xff]  ;;  %v721_v3 = vld [vmem:[#allocation8 + $0x30] sm:$0xff]  ;;  %v712_v4 = vld [vmem:[#allocation6 + $0x28] sm:$0xff]  ;;  %s507_s10 = scalar_lea.hbm %s1181_s5, %s704_s26  ;;  %s312_s13 = scalar_lea.vmem [#allocation9], %s638_s6 }
  0x29   : > { %471 = vmatpush.bf16.msra.mxu1 %v722_v2  ;;  %v720_v5 = vld [vmem:[#allocation8 + $0x28] sm:$0xff]  ;;  %v711_v6 = vld [vmem:[#allocation6 + $0x20] sm:$0xff]  ;;  %v710_v8 = vld [vmem:[#allocation6 + $0x18] sm:$0xff]  ;;  %s509_s15 = sshll.u32 %s312_s13, 4  ;;  %s511_s17 = sshll.u32 %s507_s10, 4  ;;  %s510_s15 = int_to_ptr.vmem [resolvable:$true] %s509_s15  ;;  %s512_s17 = int_to_ptr.hbm [resolvable:$true] %s511_s17 }
  0x2a   : > { %v719_v7 = vld [vmem:[#allocation8 + $0x20] sm:$0xff]  ;;  %v718_v9 = vld [vmem:[#allocation8 + $0x18] sm:$0xff]  ;;  %v709_v10 = vld [vmem:[#allocation6 + $0x10] sm:$0xff]  ;;  %s497_s8 = scalar_lea.sflag [#allocation5], %s1116_s16  ;;  %s914_s21 = sshra.s32 %s512_s17, 4  ;;  %s915_s21 = int_to_ptr.hbm [resolvable:$true] %s914_s21 }
  0x2b   : > { %v717_v11 = vld [vmem:[#allocation8 + $0x10] sm:$0xff]  ;;  %v708_v12 = vld [vmem:[#allocation6 + $0x8] sm:$0xff]  ;;  %v707_v13 = vld [vmem:[#allocation6] sm:$0xff]  ;;  %s920_s26 = scalar_lea.hbm %s1181_s5, 16  ;;  %p921_p9 = scmp.lt.s32.totalorder %s915_s21, %s1181_s5 }
  0x2c   : > { %392 = vmatpush.bf16.msra.mxu0 %v713_v1  ;;  %v322_v14 = vld [vmem:[%s1120_s24] sm:$0xf]  ;;  %v716_v15 = vld [vmem:[#allocation8 + $0x8] sm:$0xff]  ;;  %v715_v16 = vld [vmem:[#allocation8] sm:$0xff]  ;;  %s916_s24 = scalar_lea.hbm %s915_s21, 8 }
  0x2d   : > { %472 = vmatpush.bf16.msra.mxu1 %v721_v3  ;;  %v808_v17 = vld [vmem:[%s1178_s2] ss:$0 sm:$0xff]  ;;  %p917_p1 = scmp.ne.s32.totalorder %s915_s21, %s916_s24  ;;  %p922_p10 = scmp.lt.s32.totalorder %s920_s26, %s916_s24 }
  0x2e   : > { %v809_v23 = vld [vmem:[%s1180_s4] ss:$0 sm:$0xff] }
  0x2f   : > { %p918_p3 = pnand %p917_p1, %p1096_p0  ;;  %p923_p12 = por %p922_p10, %p921_p9 }
  0x30   : > { %393 = vmatpush.bf16.msra.mxu0 %v712_v4 }
  0x31   : > { %473 = vmatpush.bf16.msra.mxu1 %v720_v5  ;;  %p919_p8 = pneg %p918_p3 }
  0x33   : > { %p924_p13 = pnand %p923_p12, %p919_p8 }
  0x34   : > { %394 = vmatpush.bf16.msra.mxu0 %v711_v6 }
  0x35   : > { %474 = vmatpush.bf16.msra.mxu1 %v719_v7 }
  0x38   : > { %395 = vmatpush.bf16.msra.mxu0 %v710_v8 }
  0x39   : > { %475 = vmatpush.bf16.msra.mxu1 %v718_v9 }
  0x3c   : > { %396 = vmatpush.bf16.msra.mxu0 %v709_v10 }
  0x3d   : > { %476 = vmatpush.bf16.msra.mxu1 %v717_v11 }
  0x40   : > { %397 = vmatpush.bf16.msra.mxu0 %v708_v12 }
  0x41   : > { %477 = vmatpush.bf16.msra.mxu1 %v716_v15 }
  0x44   : > { %398 = vmatpush.bf16.msra.mxu0 %v707_v13 }
  0x45   : > { %478 = vmatpush.bf16.msra.mxu1 %v715_v16 }
  0x47   : > { %399 = vmatmul.bf16.vlgmr.msra.gmra.mxu0 %v322_v14 }
  0xc4   : > { %v400_v18 = vpop.f32.mrf.mxu0 }
  0xc5   : > { %v401_v19 = vadd.f32 %v808_v17, %v400_v18 }
  0xc7   : > { %v404_v20 = vmax.f32 %v401_v19, 0.0 }
  0xc9   : > { %v406_v21 = vpack.c.bf16 %v404_v20, %v404_v20 }
  0xcb   : > { %479 = vmatmul.bf16.vlgmr.msra.gmra.mxu1 %v406_v21 }
  0xcc   : > { %v402_v22 = vpop.f32.mrf.mxu0 }
 0x148   : > { %v480_v24 = vpop.f32.mrf.mxu1 }
 0x149   : > { %v494_v25 = vadd.f32 %v809_v23, %v480_v24 }
 0x14b   : > { %495 = vst [vmem:[%s312_s13] sm:$0xff] %v494_v25 }
 0x14c   : > { %927 = shalt.err (!%p924_p13)
}
 0x14d   : > { %733 = dma.vmem_to_hbm [thread:$0]  (%p1096_p0), %s510_s15, 128, %s512_s17, %s497_s8  }
 0x150   : > { %v482_v26 = vpop.f32.mrf.mxu1 }
 0x151 PF: > { %s523_s16 = sand.u32 1, %s966_s18   ;;  %p747_p2 = pnand %p631_p6, %p1103_p5 }
 0x152   : > { %s524_s9 = scalar_lea.sflag [#allocation5], %s523_s16 }
 0x153   : > { %p748_p4 = pneg %p747_p2 }
 0x155   : > { %961 = dma.done.wait (%p748_p4), %s524_s9, 128  }
 0x156   : > { %963 = vsyncadd (%p748_p4), %s524_s9, 4294967168  ;;  %s22_s23 = sadd.s32 1, %s986_s23   ;;  %s1187_s18 = smov %s970_s19 }
 0x157   : > { %p19_p7 = scmp.ge.s32.totalorder %s22_s23, 4   ;;  %s1188_s19 = smov %s974_s20 }
 0x158   : > { %s1189_s20 = smov %s1101_s28  ;;  %s1190_s21 = smov %s982_s22 }
 0x159   : > { %s1191_s22 = smov %s1193_s14  ;;  %21 = sbr.rel (!%p19_p7) target bundleno = 7 (0x7), region = 106 }
 0x15e   :  { %530 = vsyncpa [#allocation4], 1 }
 0x15f   :  { %532 = vsyncpa [#allocation4 + $0x1], 1 }
 0x160   :  { %533 = vsyncpa [#allocation7], 1 }
 0x161   :  { %534 = vsyncpa [#allocation5], 1 }
 0x162   :  { %536 = vsyncpa [#allocation5 + $0x1], 1 }

</bundles_post_ra>
